<compile_context>
chip_gen: v5e
topology: v5e:2x2
jax: 0.10.0
libtpu: 0.0.40
codegen_flags: <defaults>
</compile_context>

<pallas_src>
import functools

import jax
import jax.numpy as jnp
from jax import lax
from jax.experimental import pallas as pl
from jax.experimental.pallas import tpu as pltpu

LANE = 128


def _cdiv(a, b):
    return -(-a // b)


def _round_up(x, m):
    return _cdiv(x, m) * m


def _pick_batch_tile(batch, block_b):
    """Tile size / padded batch / #tiles.

    >=2 tiles whenever batch allows it (so v7x's two TensorCores both work),
    tiles a multiple of 16 sublanes (bf16 packing), minimal padding waste.
    """
    n_tiles = max(2, _cdiv(batch, block_b))
    tb = _round_up(_cdiv(batch, n_tiles), 16)
    b_pad = _round_up(batch, tb)
    return tb, b_pad, b_pad // tb


def _nnlm_kernel(ids_ref, emb_ref, w1t_ref, b1_ref, w2t_ref, w3t_ref, b2_ref,
                 o_ref):
    # ids_ref:  (TB, S)        int32   token ids for this batch tile
    # emb_ref:  (Vp, Ep)       bf16    embedding table (resident, 1-buffered)
    # w1t_ref:  (S, Ep, Hp)    bf16    per-position W1^T slabs
    # b1_ref:   (1, Hp)        f32
    # w2t_ref:  (Hp, Cp)       bf16    W2^T
    # w3t_ref:  (S, Ep, Cp)    bf16    per-position W3^T slabs
    # b2_ref:   (1, Cp)        f32     (-1e30 in padded class columns)
    # o_ref:    (TB, Cp)       bf16    softmax probabilities
    tb, seq_len = ids_ref.shape
    vp = emb_ref.shape[0]
    hp = w1t_ref.shape[2]
    cp = w3t_ref.shape[2]

    ids = ids_ref[...]                                         # (TB, S) int32
    emb = emb_ref[...]                                         # (Vp, Ep) bf16
    # Hoisted out of the unrolled loop (iota/broadcast is not CSE'd by JAX).
    class_iota = lax.broadcasted_iota(jnp.int32, (tb, vp), 1)

    h_acc = jnp.zeros((tb, hp), jnp.float32)                   # B1 + X @ W1^T acc
    l_acc = jnp.zeros((tb, cp), jnp.float32)                   # X @ W3^T acc
    for s in range(seq_len):                                   # static unroll, S small
        # Embedding gather as a one-hot MXU matmul: picks exactly one bf16 row,
        # so the f32 result is the exact embedding value (lossless cast back).
        onehot = (ids[:, s:s + 1] == class_iota).astype(emb.dtype)   # (TB, Vp)
        xs = jnp.dot(onehot, emb,
                     preferred_element_type=jnp.float32).astype(emb.dtype)  # (TB, Ep)
        h_acc = h_acc + jnp.dot(xs, w1t_ref[s],
                                preferred_element_type=jnp.float32)
        l_acc = l_acc + jnp.dot(xs, w3t_ref[s],
                                preferred_element_type=jnp.float32)

    y1 = jnp.tanh(b1_ref[...] + h_acc)                          # (TB, Hp) f32
    # NOTE: y1 is cast to bf16 for the MXU (flagged deviation from f32 torch ref).
    logits = (l_acc
              + jnp.dot(y1.astype(emb.dtype), w2t_ref[...],
                        preferred_element_type=jnp.float32)
              + b2_ref[...])                                    # (TB, Cp) f32

    # Numerically-stable softmax in f32; padded class columns carry -1e30 -> 0.
    m = jnp.max(logits, axis=-1, keepdims=True)
    e = jnp.exp(logits - m)
    denom = jnp.sum(e, axis=-1, keepdims=True)
    o_ref[...] = (e / denom).astype(o_ref.dtype)                # exact normalize, bf16 out


def prepare_params(emb, w1, b1, w2, w3, b2, *, seq_len,
                   compute_dtype=jnp.bfloat16, class_lane=LANE):
    """One-time parameter prep (transpose / pad / cast). Not on the step path.

    class_lane: pad multiple for the class (output) dim.  128 matches v5e's MXU;
    pass 256 on v6e/v7x when C is small/odd to fill the 256-wide MXU.
    """
    n_class, emb_size = emb.shape
    hidden, k = w1.shape                    # nn.Linear stores (out, in)
    assert k == seq_len * emb_size
    vp = _round_up(n_class, 8)
    ep = _round_up(emb_size, 8)
    hp = _round_up(hidden, LANE)
    cp = _round_up(w2.shape[0], class_lane)

    emb_p = jnp.zeros((vp, ep), compute_dtype).at[:n_class, :emb_size].set(
        emb.astype(compute_dtype))
    # Per-position weight slabs: W.T (S*E, out) -> (S, E, out) -> pad.
    w1t = w1.T.reshape(seq_len, emb_size, hidden).astype(compute_dtype)
    w1t_p = jnp.zeros((seq_len, ep, hp), compute_dtype).at[:, :emb_size, :hidden].set(w1t)
    w3t = w3.T.reshape(seq_len, emb_size, w3.shape[0]).astype(compute_dtype)
    w3t_p = jnp.zeros((seq_len, ep, cp), compute_dtype).at[:, :emb_size, :w3.shape[0]].set(w3t)
    w2t_p = jnp.zeros((hp, cp), compute_dtype).at[:hidden, :w2.shape[0]].set(
        w2.T.astype(compute_dtype))
    b1_p = jnp.zeros((1, hp), jnp.float32).at[:, :hidden].set(
        b1.astype(jnp.float32)[None, :])
    # Huge negative bias in padded class columns -> softmax prob exactly 0
    # (safe because logits stay f32).
    b2_p = jnp.full((1, cp), -1e30, jnp.float32).at[:, :w2.shape[0]].set(
        b2.astype(jnp.float32)[None, :])
    return emb_p, w1t_p, b1_p, w2t_p, w3t_p, b2_p


@functools.partial(jax.jit, static_argnames=("n_class", "block_b"))
def nnlm_forward(token_ids, emb_p, w1t_p, b1_p, w2t_p, w3t_p, b2_p, *,
                 n_class, block_b=128):
    """token_ids: (B, S) int32.  Returns (B, n_class) bf16 softmax probs."""
    batch, seq_len = token_ids.shape
    vp, ep = emb_p.shape
    hp = w1t_p.shape[2]
    cp = w3t_p.shape[2]

    tb, b_pad, nb = _pick_batch_tile(batch, block_b)
    ids = token_ids.astype(jnp.int32)
    if b_pad != batch:
        # Pad rows with id 0: one-hot gather stays in-bounds, rows sliced off below.
        ids = jnp.pad(ids, ((0, b_pad - batch), (0, 0)))

    flops = b_pad * (2 * seq_len * (vp * ep + ep * hp + ep * cp) + 2 * hp * cp)
    transcendentals = b_pad * (hp + cp)
    bytes_accessed = (
        b_pad * seq_len * 4                       # token ids
        + vp * ep * 2                             # embedding table
        + seq_len * ep * (hp + cp) * 2            # W1^T, W3^T slabs
        + hp * cp * 2 + (hp + cp) * 4             # W2^T + biases
        + b_pad * cp * 2                          # bf16 output
    )

    # Grid-invariant weights: single-buffered (no point double-buffering a block
    # whose index never changes; halves resident weight VMEM — matters on v7x).
    resident = pl.Buffered(1)

    out = pl.pallas_call(
        _nnlm_kernel,
        out_shape=jax.ShapeDtypeStruct((b_pad, cp), jnp.bfloat16),
        grid_spec=pltpu.PrefetchScalarGridSpec(
            num_scalar_prefetch=0,
            grid=(nb,),
            in_specs=[
                pl.BlockSpec((tb, seq_len), lambda i: (i, 0)),               # ids (streamed)
                pl.BlockSpec((vp, ep), lambda i: (0, 0),
                             pipeline_mode=resident),                         # embedding
                pl.BlockSpec((seq_len, ep, hp), lambda i: (0, 0, 0),
                             pipeline_mode=resident),                         # W1^T
                pl.BlockSpec((1, hp), lambda i: (0, 0),
                             pipeline_mode=resident),                         # B1
                pl.BlockSpec((hp, cp), lambda i: (0, 0),
                             pipeline_mode=resident),                         # W2^T
                pl.BlockSpec((seq_len, ep, cp), lambda i: (0, 0, 0),
                             pipeline_mode=resident),                         # W3^T
                pl.BlockSpec((1, cp), lambda i: (0, 0),
                             pipeline_mode=resident),                         # B2
            ],
            out_specs=pl.BlockSpec((tb, cp), lambda i: (i, 0)),
        ),
        compiler_params=pltpu.CompilerParams(
            dimension_semantics=("parallel",),          # 2 TCs on v7x (nb >= 2 when B allows)
            vmem_limit_bytes=48 * 1024 * 1024,          # explicit budget, fits v7x's 64 MiB
        ),
        cost_estimate=pl.CostEstimate(
            flops=flops,
            transcendentals=transcendentals,
            bytes_accessed=bytes_accessed,
        ),
    )(ids, emb_p, w1t_p, b1_p, w2t_p, w3t_p, b2_p)

    return out[:batch, :n_class]


if __name__ == "__main__":
    # Small shapes consistent with the module.
    batch = 8
    seq_len = 8
    embedding_size = 16
    hidden_size = 32
    n_class = 64

    key = jax.random.PRNGKey(0)
    k_emb, k_w1, k_w2, k_w3, k_ids = jax.random.split(key, 5)

    emb = jax.random.normal(k_emb, (n_class, embedding_size), jnp.float32) * 0.1
    w1 = jax.random.normal(
        k_w1, (hidden_size, seq_len * embedding_size), jnp.float32) * 0.1    # (out, in)
    b1 = jnp.ones((hidden_size,), jnp.float32)                               # B1 = ones
    w2 = jax.random.normal(k_w2, (n_class, hidden_size), jnp.float32) * 0.1
    w3 = jax.random.normal(
        k_w3, (n_class, seq_len * embedding_size), jnp.float32) * 0.1
    b2 = jnp.ones((n_class,), jnp.float32)                                   # B2 = ones

    token_ids = jax.random.randint(k_ids, (batch, seq_len), 0, n_class, jnp.int32)

    # One-time weight prep (transpose / pad / bf16 cast) — outside forward path.
    params = prepare_params(emb, w1, b1, w2, w3, b2, seq_len=seq_len)

    out = nnlm_forward(token_ids, *params, n_class=n_class)
    out = jax.block_until_ready(out)

    # Reference in plain f32 JAX.
    x_ref = jnp.take(emb, token_ids, axis=0).reshape(batch, -1)
    y1_ref = jnp.tanh(b1 + x_ref @ w1.T)
    logits_ref = y1_ref @ w2.T + b2 + x_ref @ w3.T
    ref = jax.nn.softmax(logits_ref, axis=1)

    assert out.shape == (batch, n_class)
    out_f32 = out.astype(jnp.float32)
    max_err = float(jnp.max(jnp.abs(out_f32 - ref)))
    # bf16 matmul inputs + bf16 output -> relaxed tolerance.
    assert jnp.allclose(out_f32, ref, atol=4e-3, rtol=4e-2), max_err
    assert jnp.allclose(jnp.sum(out_f32, axis=1), 1.0, atol=1.5e-2)

    print("KERNEL_OK")
</pallas_src>

<mosaic_0001>
module attributes {stable_mosaic.version = 11 : i64} {
  func.func @_nnlm_kernel(%arg0: i32, %arg1: memref<16x8xi32, #tpu.memory_space<vmem>>, %arg2: memref<64x16xbf16, #tpu.memory_space<vmem>>, %arg3: memref<8x16x128xbf16, #tpu.memory_space<vmem>>, %arg4: memref<1x128xf32, #tpu.memory_space<vmem>>, %arg5: memref<128x128xbf16, #tpu.memory_space<vmem>>, %arg6: memref<8x16x128xbf16, #tpu.memory_space<vmem>>, %arg7: memref<1x128xf32, #tpu.memory_space<vmem>>, %arg8: memref<16x128xbf16, #tpu.memory_space<vmem>>) attributes {dimension_semantics = [#tpu.dimension_semantics<parallel>], iteration_bounds = array<i64: 1>, scalar_prefetch = 0 : i64, scratch_operands = 0 : i64, tpu.core_type = #tpu.core_type<tc>, window_params = [{transform_indices = @transform_0, window_bounds = array<i64: 16, 8>}, {pipeline_mode = #tpu.pipeline_mode<synchronous>, transform_indices = @transform_1, window_bounds = array<i64: 64, 16>}, {pipeline_mode = #tpu.pipeline_mode<synchronous>, transform_indices = @transform_2, window_bounds = array<i64: 8, 16, 128>}, {pipeline_mode = #tpu.pipeline_mode<synchronous>, transform_indices = @transform_3, window_bounds = array<i64: 1, 128>}, {pipeline_mode = #tpu.pipeline_mode<synchronous>, transform_indices = @transform_4, window_bounds = array<i64: 128, 128>}, {pipeline_mode = #tpu.pipeline_mode<synchronous>, transform_indices = @transform_5, window_bounds = array<i64: 8, 16, 128>}, {pipeline_mode = #tpu.pipeline_mode<synchronous>, transform_indices = @transform_6, window_bounds = array<i64: 1, 128>}, {transform_indices = @transform_7, window_bounds = array<i64: 16, 128>}]} {
    %c0 = arith.constant 0 : index
    %c0_0 = arith.constant 0 : index
    %0 = vector.load %arg1[%c0, %c0_0] : memref<16x8xi32, #tpu.memory_space<vmem>>, vector<16x8xi32>
    %c0_1 = arith.constant 0 : index
    %c0_2 = arith.constant 0 : index
    %1 = vector.load %arg2[%c0_1, %c0_2] : memref<64x16xbf16, #tpu.memory_space<vmem>>, vector<64x16xbf16>
    %2 = tpu.iota {dimensions = array<i32: 1>} : vector<16x64xi32>
    %cst = arith.constant 0.000000e+00 : f32
    %3 = vector.broadcast %cst : f32 to vector<16x128xf32>
    %cst_3 = arith.constant 0.000000e+00 : f32
    %4 = vector.broadcast %cst_3 : f32 to vector<16x128xf32>
    %5 = vector.extract_strided_slice %0 {offsets = [0, 0], sizes = [16, 1], strides = [1, 1]} : vector<16x8xi32> to vector<16x1xi32>
    %6 = vector.broadcast %5 : vector<16x1xi32> to vector<16x64xi32>
    %7 = arith.cmpi eq, %6, %2 : vector<16x64xi32>
    %8 = arith.extui %7 : vector<16x64xi1> to vector<16x64xi32>
    %9 = arith.sitofp %8 : vector<16x64xi32> to vector<16x64xf32>
    %10 = arith.truncf %9 : vector<16x64xf32> to vector<16x64xbf16>
    %cst_4 = arith.constant dense<0.000000e+00> : vector<16x16xf32>
    %11 = tpu.matmul %10, %1, %cst_4 {dimension_numbers = #tpu.dot_dimension_numbers<[1], [0], [0], [1], [0, 0, 1, 1], [], []>} : vector<16x64xbf16>, vector<64x16xbf16>, vector<16x16xf32> -> vector<16x16xf32>
    %12 = arith.truncf %11 : vector<16x16xf32> to vector<16x16xbf16>
    %c0_5 = arith.constant 0 : index
    %c0_6 = arith.constant 0 : index
    %c0_7 = arith.constant 0 : index
    %13 = vector.load %arg3[%c0_5, %c0_6, %c0_7] : memref<8x16x128xbf16, #tpu.memory_space<vmem>>, vector<1x16x128xbf16>
    %14 = vector.shape_cast %13 : vector<1x16x128xbf16> to vector<16x128xbf16>
    %cst_8 = arith.constant dense<0.000000e+00> : vector<16x128xf32>
    %15 = tpu.matmul %12, %14, %cst_8 {dimension_numbers = #tpu.dot_dimension_numbers<[1], [0], [0], [1], [0, 0, 1, 1], [], []>} : vector<16x16xbf16>, vector<16x128xbf16>, vector<16x128xf32> -> vector<16x128xf32>
    %16 = arith.addf %3, %15 : vector<16x128xf32>
    %c0_9 = arith.constant 0 : index
    %c0_10 = arith.constant 0 : index
    %c0_11 = arith.constant 0 : index
    %17 = vector.load %arg6[%c0_9, %c0_10, %c0_11] : memref<8x16x128xbf16, #tpu.memory_space<vmem>>, vector<1x16x128xbf16>
    %18 = vector.shape_cast %17 : vector<1x16x128xbf16> to vector<16x128xbf16>
    %cst_12 = arith.constant dense<0.000000e+00> : vector<16x128xf32>
    %19 = tpu.matmul %12, %18, %cst_12 {dimension_numbers = #tpu.dot_dimension_numbers<[1], [0], [0], [1], [0, 0, 1, 1], [], []>} : vector<16x16xbf16>, vector<16x128xbf16>, vector<16x128xf32> -> vector<16x128xf32>
    %20 = arith.addf %4, %19 : vector<16x128xf32>
    %21 = vector.extract_strided_slice %0 {offsets = [0, 1], sizes = [16, 1], strides = [1, 1]} : vector<16x8xi32> to vector<16x1xi32>
    %22 = vector.broadcast %21 : vector<16x1xi32> to vector<16x64xi32>
    %23 = arith.cmpi eq, %22, %2 : vector<16x64xi32>
    %24 = arith.extui %23 : vector<16x64xi1> to vector<16x64xi32>
    %25 = arith.sitofp %24 : vector<16x64xi32> to vector<16x64xf32>
    %26 = arith.truncf %25 : vector<16x64xf32> to vector<16x64xbf16>
    %cst_13 = arith.constant dense<0.000000e+00> : vector<16x16xf32>
    %27 = tpu.matmul %26, %1, %cst_13 {dimension_numbers = #tpu.dot_dimension_numbers<[1], [0], [0], [1], [0, 0, 1, 1], [], []>} : vector<16x64xbf16>, vector<64x16xbf16>, vector<16x16xf32> -> vector<16x16xf32>
    %28 = arith.truncf %27 : vector<16x16xf32> to vector<16x16xbf16>
    %c1 = arith.constant 1 : index
    %c0_14 = arith.constant 0 : index
    %c0_15 = arith.constant 0 : index
    %29 = vector.load %arg3[%c1, %c0_14, %c0_15] : memref<8x16x128xbf16, #tpu.memory_space<vmem>>, vector<1x16x128xbf16>
    %30 = vector.shape_cast %29 : vector<1x16x128xbf16> to vector<16x128xbf16>
    %cst_16 = arith.constant dense<0.000000e+00> : vector<16x128xf32>
    %31 = tpu.matmul %28, %30, %cst_16 {dimension_numbers = #tpu.dot_dimension_numbers<[1], [0], [0], [1], [0, 0, 1, 1], [], []>} : vector<16x16xbf16>, vector<16x128xbf16>, vector<16x128xf32> -> vector<16x128xf32>
    %32 = arith.addf %16, %31 : vector<16x128xf32>
    %c1_17 = arith.constant 1 : index
    %c0_18 = arith.constant 0 : index
    %c0_19 = arith.constant 0 : index
    %33 = vector.load %arg6[%c1_17, %c0_18, %c0_19] : memref<8x16x128xbf16, #tpu.memory_space<vmem>>, vector<1x16x128xbf16>
    %34 = vector.shape_cast %33 : vector<1x16x128xbf16> to vector<16x128xbf16>
    %cst_20 = arith.constant dense<0.000000e+00> : vector<16x128xf32>
    %35 = tpu.matmul %28, %34, %cst_20 {dimension_numbers = #tpu.dot_dimension_numbers<[1], [0], [0], [1], [0, 0, 1, 1], [], []>} : vector<16x16xbf16>, vector<16x128xbf16>, vector<16x128xf32> -> vector<16x128xf32>
    %36 = arith.addf %20, %35 : vector<16x128xf32>
    %37 = vector.extract_strided_slice %0 {offsets = [0, 2], sizes = [16, 1], strides = [1, 1]} : vector<16x8xi32> to vector<16x1xi32>
    %38 = vector.broadcast %37 : vector<16x1xi32> to vector<16x64xi32>
    %39 = arith.cmpi eq, %38, %2 : vector<16x64xi32>
    %40 = arith.extui %39 : vector<16x64xi1> to vector<16x64xi32>
    %41 = arith.sitofp %40 : vector<16x64xi32> to vector<16x64xf32>
    %42 = arith.truncf %41 : vector<16x64xf32> to vector<16x64xbf16>
    %cst_21 = arith.constant dense<0.000000e+00> : vector<16x16xf32>
    %43 = tpu.matmul %42, %1, %cst_21 {dimension_numbers = #tpu.dot_dimension_numbers<[1], [0], [0], [1], [0, 0, 1, 1], [], []>} : vector<16x64xbf16>, vector<64x16xbf16>, vector<16x16xf32> -> vector<16x16xf32>
    %44 = arith.truncf %43 : vector<16x16xf32> to vector<16x16xbf16>
    %c2 = arith.constant 2 : index
    %c0_22 = arith.constant 0 : index
    %c0_23 = arith.constant 0 : index
    %45 = vector.load %arg3[%c2, %c0_22, %c0_23] : memref<8x16x128xbf16, #tpu.memory_space<vmem>>, vector<1x16x128xbf16>
    %46 = vector.shape_cast %45 : vector<1x16x128xbf16> to vector<16x128xbf16>
    %cst_24 = arith.constant dense<0.000000e+00> : vector<16x128xf32>
    %47 = tpu.matmul %44, %46, %cst_24 {dimension_numbers = #tpu.dot_dimension_numbers<[1], [0], [0], [1], [0, 0, 1, 1], [], []>} : vector<16x16xbf16>, vector<16x128xbf16>, vector<16x128xf32> -> vector<16x128xf32>
    %48 = arith.addf %32, %47 : vector<16x128xf32>
    %c2_25 = arith.constant 2 : index
    %c0_26 = arith.constant 0 : index
    %c0_27 = arith.constant 0 : index
    %49 = vector.load %arg6[%c2_25, %c0_26, %c0_27] : memref<8x16x128xbf16, #tpu.memory_space<vmem>>, vector<1x16x128xbf16>
    %50 = vector.shape_cast %49 : vector<1x16x128xbf16> to vector<16x128xbf16>
    %cst_28 = arith.constant dense<0.000000e+00> : vector<16x128xf32>
    %51 = tpu.matmul %44, %50, %cst_28 {dimension_numbers = #tpu.dot_dimension_numbers<[1], [0], [0], [1], [0, 0, 1, 1], [], []>} : vector<16x16xbf16>, vector<16x128xbf16>, vector<16x128xf32> -> vector<16x128xf32>
    %52 = arith.addf %36, %51 : vector<16x128xf32>
    %53 = vector.extract_strided_slice %0 {offsets = [0, 3], sizes = [16, 1], strides = [1, 1]} : vector<16x8xi32> to vector<16x1xi32>
    %54 = vector.broadcast %53 : vector<16x1xi32> to vector<16x64xi32>
    %55 = arith.cmpi eq, %54, %2 : vector<16x64xi32>
    %56 = arith.extui %55 : vector<16x64xi1> to vector<16x64xi32>
    %57 = arith.sitofp %56 : vector<16x64xi32> to vector<16x64xf32>
    %58 = arith.truncf %57 : vector<16x64xf32> to vector<16x64xbf16>
    %cst_29 = arith.constant dense<0.000000e+00> : vector<16x16xf32>
    %59 = tpu.matmul %58, %1, %cst_29 {dimension_numbers = #tpu.dot_dimension_numbers<[1], [0], [0], [1], [0, 0, 1, 1], [], []>} : vector<16x64xbf16>, vector<64x16xbf16>, vector<16x16xf32> -> vector<16x16xf32>
    %60 = arith.truncf %59 : vector<16x16xf32> to vector<16x16xbf16>
    %c3 = arith.constant 3 : index
    %c0_30 = arith.constant 0 : index
    %c0_31 = arith.constant 0 : index
    %61 = vector.load %arg3[%c3, %c0_30, %c0_31] : memref<8x16x128xbf16, #tpu.memory_space<vmem>>, vector<1x16x128xbf16>
    %62 = vector.shape_cast %61 : vector<1x16x128xbf16> to vector<16x128xbf16>
    %cst_32 = arith.constant dense<0.000000e+00> : vector<16x128xf32>
    %63 = tpu.matmul %60, %62, %cst_32 {dimension_numbers = #tpu.dot_dimension_numbers<[1], [0], [0], [1], [0, 0, 1, 1], [], []>} : vector<16x16xbf16>, vector<16x128xbf16>, vector<16x128xf32> -> vector<16x128xf32>
    %64 = arith.addf %48, %63 : vector<16x128xf32>
    %c3_33 = arith.constant 3 : index
    %c0_34 = arith.constant 0 : index
    %c0_35 = arith.constant 0 : index
    %65 = vector.load %arg6[%c3_33, %c0_34, %c0_35] : memref<8x16x128xbf16, #tpu.memory_space<vmem>>, vector<1x16x128xbf16>
    %66 = vector.shape_cast %65 : vector<1x16x128xbf16> to vector<16x128xbf16>
    %cst_36 = arith.constant dense<0.000000e+00> : vector<16x128xf32>
    %67 = tpu.matmul %60, %66, %cst_36 {dimension_numbers = #tpu.dot_dimension_numbers<[1], [0], [0], [1], [0, 0, 1, 1], [], []>} : vector<16x16xbf16>, vector<16x128xbf16>, vector<16x128xf32> -> vector<16x128xf32>
    %68 = arith.addf %52, %67 : vector<16x128xf32>
    %69 = vector.extract_strided_slice %0 {offsets = [0, 4], sizes = [16, 1], strides = [1, 1]} : vector<16x8xi32> to vector<16x1xi32>
    %70 = vector.broadcast %69 : vector<16x1xi32> to vector<16x64xi32>
    %71 = arith.cmpi eq, %70, %2 : vector<16x64xi32>
    %72 = arith.extui %71 : vector<16x64xi1> to vector<16x64xi32>
    %73 = arith.sitofp %72 : vector<16x64xi32> to vector<16x64xf32>
    %74 = arith.truncf %73 : vector<16x64xf32> to vector<16x64xbf16>
    %cst_37 = arith.constant dense<0.000000e+00> : vector<16x16xf32>
    %75 = tpu.matmul %74, %1, %cst_37 {dimension_numbers = #tpu.dot_dimension_numbers<[1], [0], [0], [1], [0, 0, 1, 1], [], []>} : vector<16x64xbf16>, vector<64x16xbf16>, vector<16x16xf32> -> vector<16x16xf32>
    %76 = arith.truncf %75 : vector<16x16xf32> to vector<16x16xbf16>
    %c4 = arith.constant 4 : index
    %c0_38 = arith.constant 0 : index
    %c0_39 = arith.constant 0 : index
    %77 = vector.load %arg3[%c4, %c0_38, %c0_39] : memref<8x16x128xbf16, #tpu.memory_space<vmem>>, vector<1x16x128xbf16>
    %78 = vector.shape_cast %77 : vector<1x16x128xbf16> to vector<16x128xbf16>
    %cst_40 = arith.constant dense<0.000000e+00> : vector<16x128xf32>
    %79 = tpu.matmul %76, %78, %cst_40 {dimension_numbers = #tpu.dot_dimension_numbers<[1], [0], [0], [1], [0, 0, 1, 1], [], []>} : vector<16x16xbf16>, vector<16x128xbf16>, vector<16x128xf32> -> vector<16x128xf32>
    %80 = arith.addf %64, %79 : vector<16x128xf32>
    %c4_41 = arith.constant 4 : index
    %c0_42 = arith.constant 0 : index
    %c0_43 = arith.constant 0 : index
    %81 = vector.load %arg6[%c4_41, %c0_42, %c0_43] : memref<8x16x128xbf16, #tpu.memory_space<vmem>>, vector<1x16x128xbf16>
    %82 = vector.shape_cast %81 : vector<1x16x128xbf16> to vector<16x128xbf16>
    %cst_44 = arith.constant dense<0.000000e+00> : vector<16x128xf32>
    %83 = tpu.matmul %76, %82, %cst_44 {dimension_numbers = #tpu.dot_dimension_numbers<[1], [0], [0], [1], [0, 0, 1, 1], [], []>} : vector<16x16xbf16>, vector<16x128xbf16>, vector<16x128xf32> -> vector<16x128xf32>
    %84 = arith.addf %68, %83 : vector<16x128xf32>
    %85 = vector.extract_strided_slice %0 {offsets = [0, 5], sizes = [16, 1], strides = [1, 1]} : vector<16x8xi32> to vector<16x1xi32>
    %86 = vector.broadcast %85 : vector<16x1xi32> to vector<16x64xi32>
    %87 = arith.cmpi eq, %86, %2 : vector<16x64xi32>
    %88 = arith.extui %87 : vector<16x64xi1> to vector<16x64xi32>
    %89 = arith.sitofp %88 : vector<16x64xi32> to vector<16x64xf32>
    %90 = arith.truncf %89 : vector<16x64xf32> to vector<16x64xbf16>
    %cst_45 = arith.constant dense<0.000000e+00> : vector<16x16xf32>
    %91 = tpu.matmul %90, %1, %cst_45 {dimension_numbers = #tpu.dot_dimension_numbers<[1], [0], [0], [1], [0, 0, 1, 1], [], []>} : vector<16x64xbf16>, vector<64x16xbf16>, vector<16x16xf32> -> vector<16x16xf32>
    %92 = arith.truncf %91 : vector<16x16xf32> to vector<16x16xbf16>
    %c5 = arith.constant 5 : index
    %c0_46 = arith.constant 0 : index
    %c0_47 = arith.constant 0 : index
    %93 = vector.load %arg3[%c5, %c0_46, %c0_47] : memref<8x16x128xbf16, #tpu.memory_space<vmem>>, vector<1x16x128xbf16>
    %94 = vector.shape_cast %93 : vector<1x16x128xbf16> to vector<16x128xbf16>
    %cst_48 = arith.constant dense<0.000000e+00> : vector<16x128xf32>
    %95 = tpu.matmul %92, %94, %cst_48 {dimension_numbers = #tpu.dot_dimension_numbers<[1], [0], [0], [1], [0, 0, 1, 1], [], []>} : vector<16x16xbf16>, vector<16x128xbf16>, vector<16x128xf32> -> vector<16x128xf32>
    %96 = arith.addf %80, %95 : vector<16x128xf32>
    %c5_49 = arith.constant 5 : index
    %c0_50 = arith.constant 0 : index
    %c0_51 = arith.constant 0 : index
    %97 = vector.load %arg6[%c5_49, %c0_50, %c0_51] : memref<8x16x128xbf16, #tpu.memory_space<vmem>>, vector<1x16x128xbf16>
    %98 = vector.shape_cast %97 : vector<1x16x128xbf16> to vector<16x128xbf16>
    %cst_52 = arith.constant dense<0.000000e+00> : vector<16x128xf32>
    %99 = tpu.matmul %92, %98, %cst_52 {dimension_numbers = #tpu.dot_dimension_numbers<[1], [0], [0], [1], [0, 0, 1, 1], [], []>} : vector<16x16xbf16>, vector<16x128xbf16>, vector<16x128xf32> -> vector<16x128xf32>
    %100 = arith.addf %84, %99 : vector<16x128xf32>
    %101 = vector.extract_strided_slice %0 {offsets = [0, 6], sizes = [16, 1], strides = [1, 1]} : vector<16x8xi32> to vector<16x1xi32>
    %102 = vector.broadcast %101 : vector<16x1xi32> to vector<16x64xi32>
    %103 = arith.cmpi eq, %102, %2 : vector<16x64xi32>
    %104 = arith.extui %103 : vector<16x64xi1> to vector<16x64xi32>
    %105 = arith.sitofp %104 : vector<16x64xi32> to vector<16x64xf32>
    %106 = arith.truncf %105 : vector<16x64xf32> to vector<16x64xbf16>
    %cst_53 = arith.constant dense<0.000000e+00> : vector<16x16xf32>
    %107 = tpu.matmul %106, %1, %cst_53 {dimension_numbers = #tpu.dot_dimension_numbers<[1], [0], [0], [1], [0, 0, 1, 1], [], []>} : vector<16x64xbf16>, vector<64x16xbf16>, vector<16x16xf32> -> vector<16x16xf32>
    %108 = arith.truncf %107 : vector<16x16xf32> to vector<16x16xbf16>
    %c6 = arith.constant 6 : index
    %c0_54 = arith.constant 0 : index
    %c0_55 = arith.constant 0 : index
    %109 = vector.load %arg3[%c6, %c0_54, %c0_55] : memref<8x16x128xbf16, #tpu.memory_space<vmem>>, vector<1x16x128xbf16>
    %110 = vector.shape_cast %109 : vector<1x16x128xbf16> to vector<16x128xbf16>
    %cst_56 = arith.constant dense<0.000000e+00> : vector<16x128xf32>
    %111 = tpu.matmul %108, %110, %cst_56 {dimension_numbers = #tpu.dot_dimension_numbers<[1], [0], [0], [1], [0, 0, 1, 1], [], []>} : vector<16x16xbf16>, vector<16x128xbf16>, vector<16x128xf32> -> vector<16x128xf32>
    %112 = arith.addf %96, %111 : vector<16x128xf32>
    %c6_57 = arith.constant 6 : index
    %c0_58 = arith.constant 0 : index
    %c0_59 = arith.constant 0 : index
    %113 = vector.load %arg6[%c6_57, %c0_58, %c0_59] : memref<8x16x128xbf16, #tpu.memory_space<vmem>>, vector<1x16x128xbf16>
    %114 = vector.shape_cast %113 : vector<1x16x128xbf16> to vector<16x128xbf16>
    %cst_60 = arith.constant dense<0.000000e+00> : vector<16x128xf32>
    %115 = tpu.matmul %108, %114, %cst_60 {dimension_numbers = #tpu.dot_dimension_numbers<[1], [0], [0], [1], [0, 0, 1, 1], [], []>} : vector<16x16xbf16>, vector<16x128xbf16>, vector<16x128xf32> -> vector<16x128xf32>
    %116 = arith.addf %100, %115 : vector<16x128xf32>
    %117 = vector.extract_strided_slice %0 {offsets = [0, 7], sizes = [16, 1], strides = [1, 1]} : vector<16x8xi32> to vector<16x1xi32>
    %118 = vector.broadcast %117 : vector<16x1xi32> to vector<16x64xi32>
    %119 = arith.cmpi eq, %118, %2 : vector<16x64xi32>
    %120 = arith.extui %119 : vector<16x64xi1> to vector<16x64xi32>
    %121 = arith.sitofp %120 : vector<16x64xi32> to vector<16x64xf32>
    %122 = arith.truncf %121 : vector<16x64xf32> to vector<16x64xbf16>
    %cst_61 = arith.constant dense<0.000000e+00> : vector<16x16xf32>
    %123 = tpu.matmul %122, %1, %cst_61 {dimension_numbers = #tpu.dot_dimension_numbers<[1], [0], [0], [1], [0, 0, 1, 1], [], []>} : vector<16x64xbf16>, vector<64x16xbf16>, vector<16x16xf32> -> vector<16x16xf32>
    %124 = arith.truncf %123 : vector<16x16xf32> to vector<16x16xbf16>
    %c7 = arith.constant 7 : index
    %c0_62 = arith.constant 0 : index
    %c0_63 = arith.constant 0 : index
    %125 = vector.load %arg3[%c7, %c0_62, %c0_63] : memref<8x16x128xbf16, #tpu.memory_space<vmem>>, vector<1x16x128xbf16>
    %126 = vector.shape_cast %125 : vector<1x16x128xbf16> to vector<16x128xbf16>
    %cst_64 = arith.constant dense<0.000000e+00> : vector<16x128xf32>
    %127 = tpu.matmul %124, %126, %cst_64 {dimension_numbers = #tpu.dot_dimension_numbers<[1], [0], [0], [1], [0, 0, 1, 1], [], []>} : vector<16x16xbf16>, vector<16x128xbf16>, vector<16x128xf32> -> vector<16x128xf32>
    %128 = arith.addf %112, %127 : vector<16x128xf32>
    %c7_65 = arith.constant 7 : index
    %c0_66 = arith.constant 0 : index
    %c0_67 = arith.constant 0 : index
    %129 = vector.load %arg6[%c7_65, %c0_66, %c0_67] : memref<8x16x128xbf16, #tpu.memory_space<vmem>>, vector<1x16x128xbf16>
    %130 = vector.shape_cast %129 : vector<1x16x128xbf16> to vector<16x128xbf16>
    %cst_68 = arith.constant dense<0.000000e+00> : vector<16x128xf32>
    %131 = tpu.matmul %124, %130, %cst_68 {dimension_numbers = #tpu.dot_dimension_numbers<[1], [0], [0], [1], [0, 0, 1, 1], [], []>} : vector<16x16xbf16>, vector<16x128xbf16>, vector<16x128xf32> -> vector<16x128xf32>
    %132 = arith.addf %116, %131 : vector<16x128xf32>
    %c0_69 = arith.constant 0 : index
    %c0_70 = arith.constant 0 : index
    %133 = vector.load %arg4[%c0_69, %c0_70] : memref<1x128xf32, #tpu.memory_space<vmem>>, vector<1x128xf32>
    %134 = vector.broadcast %133 : vector<1x128xf32> to vector<16x128xf32>
    %135 = arith.addf %134, %128 : vector<16x128xf32>
    %136 = math.tanh %135 : vector<16x128xf32>
    %137 = arith.truncf %136 : vector<16x128xf32> to vector<16x128xbf16>
    %c0_71 = arith.constant 0 : index
    %c0_72 = arith.constant 0 : index
    %138 = vector.load %arg5[%c0_71, %c0_72] : memref<128x128xbf16, #tpu.memory_space<vmem>>, vector<128x128xbf16>
    %cst_73 = arith.constant dense<0.000000e+00> : vector<16x128xf32>
    %139 = tpu.matmul %137, %138, %cst_73 {dimension_numbers = #tpu.dot_dimension_numbers<[1], [0], [0], [1], [0, 0, 1, 1], [], []>} : vector<16x128xbf16>, vector<128x128xbf16>, vector<16x128xf32> -> vector<16x128xf32>
    %140 = arith.addf %132, %139 : vector<16x128xf32>
    %c0_74 = arith.constant 0 : index
    %c0_75 = arith.constant 0 : index
    %141 = vector.load %arg7[%c0_74, %c0_75] : memref<1x128xf32, #tpu.memory_space<vmem>>, vector<1x128xf32>
    %142 = vector.broadcast %141 : vector<1x128xf32> to vector<16x128xf32>
    %143 = arith.addf %140, %142 : vector<16x128xf32>
    %cst_76 = arith.constant dense<0xFF800000> : vector<16xf32>
    %144 = vector.multi_reduction <maximumf>, %143, %cst_76 [1] : vector<16x128xf32> to vector<16xf32>
    %145 = vector.shape_cast %144 : vector<16xf32> to vector<16x1xf32>
    %146 = vector.broadcast %145 : vector<16x1xf32> to vector<16x128xf32>
    %147 = arith.subf %143, %146 : vector<16x128xf32>
    %148 = math.exp %147 : vector<16x128xf32>
    %cst_77 = arith.constant dense<0.000000e+00> : vector<16xf32>
    %149 = vector.multi_reduction <add>, %148, %cst_77 [1] : vector<16x128xf32> to vector<16xf32>
    %150 = vector.shape_cast %149 : vector<16xf32> to vector<16x1xf32>
    %151 = vector.broadcast %150 : vector<16x1xf32> to vector<16x128xf32>
    %152 = arith.divf %148, %151 : vector<16x128xf32>
    %153 = arith.truncf %152 : vector<16x128xf32> to vector<16x128xbf16>
    %c0_78 = arith.constant 0 : index
    %c0_79 = arith.constant 0 : index
    %154 = vector.load %arg8[%c0_78, %c0_79] : memref<16x128xbf16, #tpu.memory_space<vmem>>, vector<16x128xbf16>
    tpu.vector_store %arg8[%c0_78, %c0_79], %153 {strides = array<i32>} : memref<16x128xbf16, #tpu.memory_space<vmem>>, vector<16x128xbf16>,
    return
  }
  func.func @transform_0(%arg0: i32) -> (i32, i32) {
    %c0_i32 = arith.constant 0 : i32
    %c0_i32_0 = arith.constant 0 : i32
    return %arg0, %c0_i32 : i32, i32
  }
  func.func @transform_1(%arg0: i32) -> (i32, i32) {
    %c0_i32 = arith.constant 0 : i32
    %c0_i32_0 = arith.constant 0 : i32
    %c0_i32_1 = arith.constant 0 : i32
    return %c0_i32, %c0_i32_0 : i32, i32
  }
  func.func @transform_2(%arg0: i32) -> (i32, i32, i32) {
    %c0_i32 = arith.constant 0 : i32
    %c0_i32_0 = arith.constant 0 : i32
    %c0_i32_1 = arith.constant 0 : i32
    %c0_i32_2 = arith.constant 0 : i32
    return %c0_i32, %c0_i32_0, %c0_i32_1 : i32, i32, i32
  }
  func.func @transform_3(%arg0: i32) -> (i32, i32) {
    %c0_i32 = arith.constant 0 : i32
    %c0_i32_0 = arith.constant 0 : i32
    %c0_i32_1 = arith.constant 0 : i32
    return %c0_i32, %c0_i32_0 : i32, i32
  }
  func.func @transform_4(%arg0: i32) -> (i32, i32) {
    %c0_i32 = arith.constant 0 : i32
    %c0_i32_0 = arith.constant 0 : i32
    %c0_i32_1 = arith.constant 0 : i32
    return %c0_i32, %c0_i32_0 : i32, i32
  }
  func.func @transform_5(%arg0: i32) -> (i32, i32, i32) {
    %c0_i32 = arith.constant 0 : i32
    %c0_i32_0 = arith.constant 0 : i32
    %c0_i32_1 = arith.constant 0 : i32
    %c0_i32_2 = arith.constant 0 : i32
    return %c0_i32, %c0_i32_0, %c0_i32_1 : i32, i32, i32
  }
  func.func @transform_6(%arg0: i32) -> (i32, i32) {
    %c0_i32 = arith.constant 0 : i32
    %c0_i32_0 = arith.constant 0 : i32
    %c0_i32_1 = arith.constant 0 : i32
    return %c0_i32, %c0_i32_0 : i32, i32
  }
  func.func @transform_7(%arg0: i32) -> (i32, i32) {
    %c0_i32 = arith.constant 0 : i32
    %c0_i32_0 = arith.constant 0 : i32
    return %arg0, %c0_i32 : i32, i32
  }
}

</mosaic_0001>

<bundles_post_ra>
// kernel: nnlm_forward.1
= control target key start
LH: loop header
LB: loop body
LE: loop exit
PB: predicated region body
PF: predicated region fallthrough
CT: control target
= control target key end

     0   :  { %12 = vsyncpa [#allocation3], 0  ;;  %s1443_s0 = inlined_call_operand.vmem [shape: s32[16,8], index: 0, kind: input, shape index: {}]   ;;  %s1444_s1 = inlined_call_operand.vmem [shape: bf16[64,16], index: 1, kind: input, shape index: {}]   ;;  %s1445_s2 = inlined_call_operand.vmem [shape: bf16[8,16,128], index: 2, kind: input, shape index: {}]   ;;  %s1446_s3 = inlined_call_operand.vmem [shape: f32[1,128], index: 3, kind: input, shape index: {}]   ;;  %s1447_s4 = inlined_call_operand.hbm [shape: bf16[128,128], index: 4, kind: input, shape index: {}]   ;;  %s1448_s5 = inlined_call_operand.hbm [shape: bf16[8,16,128], index: 5, kind: input, shape index: {}]   ;;  %s1449_s6 = inlined_call_operand.vmem [shape: f32[1,128], index: 6, kind: input, shape index: {}]   ;;  %s1450_s7 = inlined_call_operand.vmem [shape: bf16[16,128], index: 7, kind: output, shape index: {}]  }
   0x1   :  { %s26_s26 = sshll.u32 %s1447_s4, 4  ;;  %s27_s26 = int_to_ptr.hbm [resolvable:$true] %s26_s26 }
   0x2   :  { %13 = vsyncpa [#allocation5], 0  ;;  %s1200_s27 = smov [#allocation2]   ;;  %s39_s8 = sshll.u32 %s1448_s5, 4  ;;  %s40_s8 = int_to_ptr.hbm [resolvable:$true] %s39_s8 }
   0x3   :  { %s28_s28 = sshll.u32 %s1200_s27, 4  ;;  %s1201_s9 = smov 64   ;;  %s29_s28 = int_to_ptr.vmem [resolvable:$true] %s28_s28 }
   0x4   :  { %s1202_s10 = smov 4   ;;  %s1203_s11 = smov [#allocation4]  }
   0x5   :  { %34 = dma.hbm_to_vmem [thread:$0]  %s27_s26, 1024, %s29_s28, [#allocation3], %s1201_s9, %s1201_s9, %s1202_s10  }
   0x6   :  { %s41_s12 = sshll.u32 %s1203_s11, 4  ;;  %s42_s12 = int_to_ptr.vmem [resolvable:$true] %s41_s12 }
   0x7   :  { %47 = dma.hbm_to_vmem [thread:$0]  %s40_s8, 1024, %s42_s12, [#allocation5], %s1201_s9, %s1201_s9, %s1202_s10  }
   0x8   :  { %1196 = dma.done.wait [#allocation3], 1024  }
   0x9   :  { %1197 = vsyncadd [#allocation3], 4294966272 }
   0xa   :  { %1198 = dma.done.wait [#allocation5], 1024  }
   0xb   :  { %1199 = vsyncadd [#allocation5], 4294966272  ;;  %v1204_v0 = vmov 1   ;;  %v1205_v1 = vmov 0   ;;  %v1206_v2 = vmov 2   ;;  %v1262_v3 = vld [vmem:[%s1443_s0] sm:$0xff]  ;;  %v69_v10 = vlaneseq }
   0xc   :  { %1120 = vset.pattern.permute.xlu0 %v1204_v0  ;;  %1121 = vset.pattern.permute.xlu1 %v1205_v1  ;;  %v1267_v4 = vld [vmem:[%s1444_s1 + $0x18] sm:$0xff]  ;;  %v1277_v5 = vld [vmem:[%s1443_s0 + $0x8] sm:$0xff]  ;;  %v1285_v6 = vld [vmem:[%s1444_s1 + $0x10] sm:$0xff]  ;;  %v1207_v9 = vmov 3   ;;  %v1208_v13 = vmov 4   ;;  %v1209_v16 = vmov 0.0  }
   0xd   :  { %1122 = vset.pattern.permute.xlu2 %v1206_v2  ;;  %72 = vperm.xlu1 %1121, %v1262_v3   ;;  %v1292_v7 = vld [vmem:[%s1444_s1 + $0x8] sm:$0xff]  ;;  %v1299_v8 = vld [vmem:[%s1444_s1] sm:$0xff]  ;;  %v1310_v14 = vand.u32 127, %v69_v10  ;;  %vm108_vm4 = vcmask 523264   ;;  %v1082_v32 = vld [vmem:[%s1445_s2 + $0x10] sm:$0xff]  ;;  %vm171_vm7 = vcmask 130048  }
   0xe   :  { %132 = vperm.xlu0 %1120, %v1262_v3   ;;  %256 = vperm.xlu2 %1122, %v1262_v3   ;;  %v1080_v29 = vld [vmem:[%s1445_s2 + $0x8] sm:$0xff]  ;;  %v1078_v31 = vld [vmem:[%s1445_s2] sm:$0xff]  ;;  %v1083_v33 = vld [vmem:[#allocation4 + $0x10] sm:$0xff]  ;;  %v1210_v45 = vmov 5   ;;  %v1211_v46 = vmov 7   ;;  %v1212_v51 = vmov 6  }
   0xf   :  { %116 = vmatpush.bf16.msra.mxu0 %v1267_v4  ;;  %151 = vmatpush.bf16.msra.mxu1 %v1267_v4  ;;  %v1081_v30 = vld [vmem:[#allocation4 + $0x8] sm:$0xff]  ;;  %v1079_v38 = vld [vmem:[#allocation4] sm:$0xff]  ;;  %v1085_v61 = vld [vmem:[#allocation4 + $0x18] sm:$0xff] }
  0x10   :  { %182 = vmatpush.bf16.msra.mxu3 %v1080_v29  ;;  %228 = vmatpush.bf16.msra.mxu2 %v1081_v30  ;;  %v1086_v0 = vld [vmem:[%s1445_s2 + $0x20] sm:$0xff] }
  0x13   :  { %117 = vmatpush.bf16.msra.mxu0 %v1285_v6  ;;  %152 = vmatpush.bf16.msra.mxu1 %v1285_v6 }
  0x14   :  { %205 = vmatpush.bf16.msrb.mxu3 %v1078_v31  ;;  %330 = vmatpush.bf16.msrb.mxu2 %v1083_v33 }
  0x15   :  { %75 = vperm.xlu1 %1121, %v1277_v5  }
  0x16   :  { %135 = vperm.xlu0 %1120, %v1277_v5   ;;  %259 = vperm.xlu2 %1122, %v1277_v5  }
  0x17   :  { %118 = vmatpush.bf16.msra.mxu0 %v1292_v7  ;;  %153 = vmatpush.bf16.msra.mxu1 %v1292_v7 }
  0x1b   :  { %119 = vmatpush.bf16.msra.mxu0 %v1299_v8  ;;  %154 = vmatpush.bf16.msra.mxu1 %v1299_v8 }
  0x1d   :  { %1124 = vset.pattern.permute.xlu1 %v1207_v9 }
  0x1e   :  { %1123 = vset.pattern.permute.xlu0 %v1207_v9  ;;  %343 = vperm.xlu1 %1124, %v1277_v5  }
  0x1f   :  { %275 = vmatpush.bf16.msrb.mxu0 %v1267_v4  ;;  %340 = vperm.xlu0 %1123, %v1262_v3  }
  0x20   :  { %1125 = vset.pattern.permute.xlu2 %v1208_v13  ;;  %305 = vmatpush.bf16.msrb.mxu1 %v1082_v32 }
  0x21   :  { %424 = vperm.xlu2 %1125, %v1262_v3  }
  0x23   :  { %276 = vmatpush.bf16.msrb.mxu0 %v1285_v6 }
  0x26   :  { %1126 = vset.pattern.permute.xlu1 %v1208_v13 }
  0x27   :  { %277 = vmatpush.bf16.msrb.mxu0 %v1292_v7  ;;  %427 = vperm.xlu1 %1126, %v1277_v5  }
  0x28   :  { %1128 = vset.pattern.permute.xlu0 %v1210_v45 }
  0x29   :  { %511 = vperm.xlu0 %1128, %v1277_v5   ;;  %1127 = vset.pattern.permute.xlu2 %v1210_v45 }
  0x2a   :  { %508 = vperm.xlu2 %1127, %v1262_v3  }
  0x2b   :  { %278 = vmatpush.bf16.msrb.mxu0 %v1299_v8 }
  0x2f   :  { %1129 = vset.pattern.permute.xlu1 %v1211_v46 }
  0x30   :  { %676 = vperm.xlu1 %1129, %v1262_v3  }
  0x31   :  { %1133 = vset.pattern.permute.xlu0 %v1211_v46 }
  0x32   :  { %1130 = vset.pattern.permute.xlu2 %v1211_v46 }
  0x33   :  { %679 = vperm.xlu2 %1130, %v1277_v5  }
  0x38   :  { %1131 = vset.pattern.permute.xlu1 %v1212_v51 }
  0x39   :  { %592 = vperm.xlu1 %1131, %v1262_v3  }
  0x3b   :  { %1132 = vset.pattern.permute.xlu2 %v1212_v51 }
  0x3c   :  { %595 = vperm.xlu2 %1132, %v1277_v5   ;;  %v1084_v5 = vld [vmem:[%s1445_s2 + $0x18] sm:$0xff] }
  0x68   :  { %v257_v15 = vpop.permute.xlu2 %256 }
  0x69   :  { %vm261_vm5 = vcmp.eq.s32.totalorder %v257_v15, %v1310_v14 }
  0x6a   :  { %v952_v26 = vsel %vm261_vm5, 1.0, %v1209_v16 }
  0x70   :  { %v260_v25 = vpop.permute.xlu2 %259 }
  0x71   :  { %vm262_vm6 = vcmp.eq.s32.totalorder %v260_v25, %v1310_v14 }
  0x72   :  { %v953_v27 = vsel %vm262_vm6, 1.0, %v1209_v16 }
  0x73   :  { %v267_v28 = vpack.c.bf16 %v953_v27, %v952_v26 }
  0x7b   :  { %v425_v47 = vpop.permute.xlu2 %424 }
  0x7c   :  { %vm429_vm8 = vcmp.eq.s32.totalorder %v425_v47, %v1310_v14 }
  0x7d   :  { %v982_v49 = vsel %vm429_vm8, 1.0, %v1209_v16 }
  0x7f   :  { %v73_v11 = vpop.permute.xlu1 %72 }
  0x80   :  { %v133_v12 = vpop.permute.xlu0 %132  ;;  %vm77_vm0 = vcmp.eq.s32.totalorder %v73_v11, %v1310_v14 }
  0x81   :  { %vm137_vm1 = vcmp.eq.s32.totalorder %v133_v12, %v1310_v14  ;;  %v908_v17 = vsel %vm77_vm0, 1.0, %v1209_v16  ;;  %v1087_v12 = vld [vmem:[#allocation4 + $0x20] sm:$0xff] }
  0x82   :  { %v927_v20 = vsel %vm137_vm1, 1.0, %v1209_v16 }
  0x87   :  { %v76_v18 = vpop.permute.xlu1 %75 }
  0x88   :  { %v136_v19 = vpop.permute.xlu0 %135  ;;  %vm78_vm2 = vcmp.eq.s32.totalorder %v76_v18, %v1310_v14  ;;  %v509_v18 = vpop.permute.xlu2 %508 }
  0x89   :  { %vm138_vm3 = vcmp.eq.s32.totalorder %v136_v19, %v1310_v14  ;;  %v909_v21 = vsel %vm78_vm2, 1.0, %v1209_v16  ;;  %vm513_vm14 = vcmp.eq.s32.totalorder %v509_v18, %v1310_v14  ;;  %v1097_v18 = vld [vmem:[#allocation2 + $0x18] sm:$0xff] }
  0x8a   :  { %v928_v22 = vsel %vm138_vm3, 1.0, %v1209_v16  ;;  %v83_v23 = vpack.c.bf16 %v909_v21, %v908_v17 }
  0x8b   :  { %v143_v24 = vpack.c.bf16 %v928_v22, %v927_v20 }
  0x8c   :  { %926 = vmatmul.msk.bf16.vlgmr.msra.gmra.mxu0 %vm108_vm4, %v83_v23 }
  0x8d   :  { %929 = vmatmul.msk.bf16.vlgmr.msra.gmra.mxu1 %vm108_vm4, %v143_v24  ;;  %389 = vmatpush.bf16.msra.mxu0 %v1084_v5 }
  0x8e   :  { %414 = vmatpush.bf16.msra.mxu1 %v1085_v61 }
  0x90   :  { %v344_v41 = vpop.permute.xlu1 %343  ;;  %v680_v24 = vpop.permute.xlu2 %679 }
  0x91   :  { %v341_v53 = vpop.permute.xlu0 %340  ;;  %vm346_vm10 = vcmp.eq.s32.totalorder %v344_v41, %v1310_v14  ;;  %vm682_vm12 = vcmp.eq.s32.totalorder %v680_v24, %v1310_v14 }
  0x92   :  { %vm345_vm11 = vcmp.eq.s32.totalorder %v341_v53, %v1310_v14  ;;  %v968_v54 = vsel %vm346_vm10, 1.0, %v1209_v16  ;;  %v1385_v27 = vsel %vm682_vm12, 1.0, %v1209_v16 }
  0x93   :  { %v967_v55 = vsel %vm345_vm11, 1.0, %v1209_v16 }
  0x94   :  { %v351_v56 = vpack.c.bf16 %v968_v54, %v967_v55 }
  0x99   :  { %v428_v48 = vpop.permute.xlu1 %427 }
  0x9a   :  { %vm430_vm9 = vcmp.eq.s32.totalorder %v428_v48, %v1310_v14 }
  0x9b   :  { %v983_v50 = vsel %vm430_vm9, 1.0, %v1209_v16  ;;  %v512_v33 = vpop.permute.xlu0 %511 }
  0x9c   :  { %954 = vmatmul.msk.bf16.vlgmr.msrb.gmra.mxu0 %vm108_vm4, %v267_v28  ;;  %v435_v52 = vpack.c.bf16 %v983_v50, %v982_v49  ;;  %vm514_vm15 = vcmp.eq.s32.totalorder %v512_v33, %v1310_v14 }
  0x9d   :  { %498 = vmatpush.bf16.msrb.mxu0 %v1087_v12 }
  0xa2   :  { %v677_v25 = vpop.permute.xlu1 %676 }
  0xa3   :  { %vm681_vm13 = vcmp.eq.s32.totalorder %v677_v25, %v1310_v14 }
  0xa4   :  { %v1388_v28 = vsel %vm681_vm13, 1.0, %v1209_v16 }
  0xa5   :  { %v687_v29 = vpack.c.bf16 %v1385_v27, %v1388_v28 }
 0x109   :  { %v121_v34 = vpop.f32.mrf.mxu0 }
 0x10a   :  { %v156_v35 = vpop.f32.mrf.mxu1 }
 0x111   :  { %v123_v36 = vpop.f32.mrf.mxu0 }
 0x112   :  { %v158_v37 = vpop.f32.mrf.mxu1  ;;  %v126_v43 = vpack.c.bf16 %v123_v36, %v121_v34  ;;  %v997_v34 = vsel %vm513_vm14, 1.0, %v1209_v16 }
 0x113   :  { %v161_v39 = vpack.c.bf16 %v158_v37, %v156_v35  ;;  %v998_v35 = vsel %vm514_vm15, 1.0, %v1209_v16  ;;  %v596_v37 = vpop.permute.xlu2 %595 }
 0x114   :  { %v519_v36 = vpack.c.bf16 %v998_v35, %v997_v34  ;;  %vm598_vm0 = vcmp.eq.s32.totalorder %v596_v37, %v1310_v14 }
 0x115   :  { %936 = vmatmul.msk.bf16.vlgmr.msra.gmra.mxu3 %vm171_vm7, %v161_v39  ;;  %946 = vmatmul.msk.bf16.vlgmr.msra.gmra.mxu2 %vm171_vm7, %v161_v39  ;;  %v1013_v39 = vsel %vm598_vm0, 1.0, %v1209_v16 }
 0x116   :  { %248 = vmatpush.bf16.msra.mxu3 %v1079_v38  ;;  %443 = vmatpush.bf16.msra.mxu2 %v1267_v4  ;;  %v593_v38 = vpop.permute.xlu1 %592 }
 0x117   :  { %vm597_vm1 = vcmp.eq.s32.totalorder %v593_v38, %v1310_v14 }
 0x119   :  { %v280_v40 = vpop.f32.mrf.mxu0 }
 0x11a   :  { %444 = vmatpush.bf16.msra.mxu2 %v1285_v6 }
 0x11e   :  { %445 = vmatpush.bf16.msra.mxu2 %v1292_v7 }
 0x121   :  { %v282_v42 = vpop.f32.mrf.mxu0 }
 0x122   :  { %446 = vmatpush.bf16.msra.mxu2 %v1299_v8  ;;  %v285_v44 = vpack.c.bf16 %v282_v42, %v280_v40  ;;  %v1012_v40 = vsel %vm597_vm1, 1.0, %v1209_v16  ;;  %v1089_v42 = vld [vmem:[#allocation4 + $0x28] sm:$0xff] }
 0x123   :  { %v603_v41 = vpack.c.bf16 %v1013_v39, %v1012_v40 }
 0x124   :  { %961 = vmatmul.msk.bf16.vlgmr.msrb.gmra.mxu1 %vm171_vm7, %v285_v44 }
 0x125   :  { %941 = vmatmul.msk.bf16.vlgmr.msrb.gmra.mxu3 %vm171_vm7, %v126_v43  ;;  %966 = vmatmul.msk.bf16.vlgmr.msrb.gmra.mxu2 %vm171_vm7, %v285_v44 }
 0x126   :  { %359 = vmatpush.bf16.msrb.mxu3 %v1267_v4  ;;  %527 = vmatpush.bf16.msrb.mxu1 %v1267_v4 }
 0x12a   :  { %360 = vmatpush.bf16.msrb.mxu3 %v1285_v6  ;;  %528 = vmatpush.bf16.msrb.mxu1 %v1285_v6 }
 0x12e   :  { %361 = vmatpush.bf16.msrb.mxu3 %v1292_v7  ;;  %529 = vmatpush.bf16.msrb.mxu1 %v1292_v7 }
 0x132   :  { %362 = vmatpush.bf16.msrb.mxu3 %v1299_v8  ;;  %530 = vmatpush.bf16.msrb.mxu1 %v1299_v8 }
 0x135   :  { %951 = vmatmul.msk.bf16.vlgmr.msra.gmra.mxu3 %vm171_vm7, %v126_v43  ;;  %984 = vmatmul.msk.bf16.vlgmr.msra.gmra.mxu2 %vm108_vm4, %v435_v52  ;;  %v1088_v43 = vld [vmem:[%s1445_s2 + $0x28] sm:$0xff] }
 0x136   :  { %473 = vmatpush.bf16.msra.mxu3 %v1086_v0  ;;  %557 = vmatpush.bf16.msrb.mxu2 %v1088_v43 }
 0x145   :  { %969 = vmatmul.msk.bf16.vlgmr.msrb.gmra.mxu3 %vm108_vm4, %v351_v56 }
 0x146   :  { %582 = vmatpush.bf16.msrb.mxu3 %v1089_v42 }
 0x198   :  { %v184_v57 = vpop.f32.mrf.mxu3  ;;  %v230_v58 = vpop.f32.mrf.mxu2 }
 0x1a0   :  { %v186_v59 = vpop.f32.mrf.mxu3  ;;  %v232_v60 = vpop.f32.mrf.mxu2 }
 0x1a1   :  { %v307_v63 = vpop.f32.mrf.mxu1 }
 0x1a8   :  { %v207_v62 = vpop.f32.mrf.mxu3  ;;  %v332_v2 = vpop.f32.mrf.mxu2 }
 0x1a9   :  { %v208_v1 = vadd.f32 %v207_v62, %v184_v57  ;;  %v309_v14 = vpop.f32.mrf.mxu1  ;;  %v1092_v62 = vld [vmem:[%s1445_s2 + $0x38] sm:$0xff] }
 0x1ab   :  { %v1372_v3 = vadd.f32 %v307_v63, %v208_v1  ;;  %v1093_v63 = vld [vmem:[#allocation4 + $0x38] sm:$0xff] }
 0x1ac   :  { %v1101_v1 = vld [vmem:[#allocation2 + $0x38] sm:$0xff] }
 0x1b0   :  { %v209_v9 = vpop.f32.mrf.mxu3  ;;  %v334_v11 = vpop.f32.mrf.mxu2 }
 0x1b1   :  { %v1379_v10 = vadd.f32 %v209_v9, %v186_v59  ;;  %v1099_v9 = vld [vmem:[#allocation2 + $0x28] sm:$0xff] }
 0x1b3   :  { %v313_v49 = vadd.f32 %v309_v14, %v1379_v10 }
 0x1b8   :  { %v250_v13 = vpop.f32.mrf.mxu3  ;;  %v448_v17 = vpop.f32.mrf.mxu2 }
 0x1b9   :  { %v251_v15 = vadd.f32 %v250_v13, %v230_v58 }
 0x1bb   :  { %v337_v19 = vadd.f32 %v332_v2, %v251_v15  ;;  %v1100_v2 = vld [vmem:[#allocation2 + $0x30] sm:$0xff] }
 0x1c0   :  { %v252_v20 = vpop.f32.mrf.mxu3  ;;  %v450_v22 = vpop.f32.mrf.mxu2 }
 0x1c1   :  { %v253_v21 = vadd.f32 %v252_v20, %v232_v60  ;;  %v453_v23 = vpack.c.bf16 %v450_v22, %v448_v17  ;;  %v1098_v17 = vld [vmem:[#allocation2 + $0x20] sm:$0xff]  ;;  %v1095_v20 = vld [vmem:[#allocation2 + $0x8] sm:$0xff] }
 0x1c3   :  { %v338_v26 = vadd.f32 %v334_v11, %v253_v21  ;;  %991 = vmatmul.msk.bf16.vlgmr.msra.gmra.mxu3 %vm171_vm7, %v453_v23  ;;  %v1094_v21 = vld [vmem:[#allocation2] sm:$0xff] }
 0x1c4   :  { %695 = vmatpush.bf16.msra.mxu3 %v1267_v4 }
 0x1c8   :  { %v364_v30 = vpop.f32.mrf.mxu3  ;;  %696 = vmatpush.bf16.msra.mxu3 %v1285_v6 }
 0x1cc   :  { %697 = vmatpush.bf16.msra.mxu3 %v1292_v7 }
 0x1d0   :  { %v366_v31 = vpop.f32.mrf.mxu3  ;;  %698 = vmatpush.bf16.msra.mxu3 %v1299_v8 }
 0x1d1   :  { %v369_v32 = vpack.c.bf16 %v366_v31, %v364_v30  ;;  %v1134_v31 = vld [vmem:[%s1446_s3] ss:$0 sm:$0xff] }
 0x1d3   :  { %976 = vmatmul.msk.bf16.vlgmr.msra.gmra.mxu0 %vm171_vm7, %v369_v32  ;;  %981 = vmatmul.msk.bf16.vlgmr.msra.gmra.mxu1 %vm171_vm7, %v369_v32 }
 0x1d4   :  { %611 = vmatpush.bf16.msra.mxu0 %v1267_v4  ;;  %v1090_v4 = vld [vmem:[%s1445_s2 + $0x30] sm:$0xff] }
 0x1d5   :  { %641 = vmatpush.bf16.msra.mxu1 %v1090_v4 }
 0x1d8   :  { %612 = vmatpush.bf16.msra.mxu0 %v1285_v6  ;;  %v1091_v6 = vld [vmem:[#allocation4 + $0x30] sm:$0xff] }
 0x1d9   :  { %666 = vmatpush.bf16.msra.mxu2 %v1091_v6 }
 0x1dc   :  { %613 = vmatpush.bf16.msra.mxu0 %v1292_v7 }
 0x1e0   :  { %614 = vmatpush.bf16.msra.mxu0 %v1299_v8 }
 0x1e3   :  { %996 = vmatmul.msk.bf16.vlgmr.msrb.gmra.mxu0 %vm171_vm7, %v453_v23  ;;  %999 = vmatmul.msk.bf16.vlgmr.msrb.gmra.mxu1 %vm108_vm4, %v519_v36 }
 0x1e4   :  { %725 = vmatpush.bf16.msrb.mxu0 %v1092_v62  ;;  %750 = vmatpush.bf16.msrb.mxu1 %v1093_v63 }
 0x1f3   :  { %1014 = vmatmul.msk.bf16.vlgmr.msra.gmra.mxu0 %vm108_vm4, %v603_v41 }
 0x246   :  { %v475_v16 = vpop.f32.mrf.mxu3 }
 0x24e   :  { %v477_v0 = vpop.f32.mrf.mxu3 }
 0x250   :  { %v391_v44 = vpop.f32.mrf.mxu0  ;;  %v416_v45 = vpop.f32.mrf.mxu1 }
 0x251   :  { %v396_v46 = vadd.f32 %v391_v44, %v1372_v3  ;;  %v421_v47 = vadd.f32 %v416_v45, %v337_v19  ;;  %v1096_v19 = vld [vmem:[#allocation2 + $0x10] sm:$0xff]  ;;  %v1135_v44 = vld [vmem:[%s1449_s6] ss:$0 sm:$0xff] }
 0x253   :  { %v480_v48 = vadd.f32 %v475_v16, %v396_v46 }
 0x258   :  { %v393_v50 = vpop.f32.mrf.mxu0  ;;  %v418_v7 = vpop.f32.mrf.mxu1 }
 0x259   :  { %v397_v51 = vadd.f32 %v393_v50, %v313_v49  ;;  %v422_v8 = vadd.f32 %v418_v7, %v338_v26 }
 0x25b   :  { %v481_v28 = vadd.f32 %v477_v0, %v397_v51 }
 0x260   :  { %v500_v52 = vpop.f32.mrf.mxu0  ;;  %v532_v53 = vpop.f32.mrf.mxu1 }
 0x261   :  { %v505_v54 = vadd.f32 %v500_v52, %v421_v47 }
 0x268   :  { %v502_v55 = vpop.f32.mrf.mxu0  ;;  %v534_v56 = vpop.f32.mrf.mxu1 }
 0x269   :  { %v506_v57 = vadd.f32 %v502_v55, %v422_v8  ;;  %v537_v58 = vpack.c.bf16 %v534_v56, %v532_v53 }
 0x26b   :  { %1006 = vmatmul.msk.bf16.vlgmr.msrb.gmra.mxu2 %vm171_vm7, %v537_v58  ;;  %1011 = vmatmul.msk.bf16.vlgmr.msrb.gmra.mxu3 %vm171_vm7, %v537_v58 }
 0x26c   :  { %832 = vmatpush.bf16.msrb.mxu2 %v1101_v1 }
 0x270   :  { %v616_v59 = vpop.f32.mrf.mxu0  ;;  %833 = vmatpush.bf16.msrb.mxu2 %v1100_v2 }
 0x274   :  { %834 = vmatpush.bf16.msrb.mxu2 %v1099_v9 }
 0x278   :  { %v618_v60 = vpop.f32.mrf.mxu0  ;;  %835 = vmatpush.bf16.msrb.mxu2 %v1098_v17 }
 0x279   :  { %v621_v61 = vpack.c.bf16 %v618_v60, %v616_v59 }
 0x27b   :  { %1021 = vmatmul.msk.bf16.vlgmr.msra.gmra.mxu1 %vm171_vm7, %v621_v61  ;;  %1026 = vmatmul.msk.bf16.vlgmr.msra.gmra.mxu2 %vm171_vm7, %v621_v61 }
 0x27c   :  { %1029 = vmatmul.msk.bf16.vlgmr.msra.gmra.mxu3 %vm108_vm4, %v687_v29  ;;  %836 = vmatpush.bf16.msrb.mxu2 %v1097_v18 }
 0x280   :  { %837 = vmatpush.bf16.msrb.mxu2 %v1096_v19 }
 0x284   :  { %838 = vmatpush.bf16.msrb.mxu2 %v1095_v20 }
 0x288   :  { %839 = vmatpush.bf16.msrb.mxu2 %v1094_v21 }
 0x2ee   :  { %v584_v3 = vpop.f32.mrf.mxu3  ;;  %v559_v22 = vpop.f32.mrf.mxu2 }
 0x2ef   :  { %v589_v5 = vadd.f32 %v584_v3, %v505_v54  ;;  %v564_v24 = vadd.f32 %v559_v22, %v480_v48 }
 0x2f6   :  { %v586_v10 = vpop.f32.mrf.mxu3  ;;  %v561_v26 = vpop.f32.mrf.mxu2 }
 0x2f7   :  { %v590_v11 = vadd.f32 %v586_v10, %v506_v57  ;;  %v565_v32 = vadd.f32 %v561_v26, %v481_v28 }
 0x2f8   :  { %v643_v23 = vpop.f32.mrf.mxu1 }
 0x2f9   :  { %v648_v27 = vadd.f32 %v643_v23, %v564_v24 }
 0x2fe   :  { %v668_v41 = vpop.f32.mrf.mxu2 }
 0x2ff   :  { %v700_v12 = vpop.f32.mrf.mxu3  ;;  %v673_v14 = vadd.f32 %v668_v41, %v589_v5 }
 0x300   :  { %v645_v29 = vpop.f32.mrf.mxu1 }
 0x301   :  { %v649_v33 = vadd.f32 %v645_v29, %v565_v32 }
 0x306   :  { %v670_v42 = vpop.f32.mrf.mxu2 }
 0x307   :  { %v702_v13 = vpop.f32.mrf.mxu3  ;;  %v674_v4 = vadd.f32 %v670_v42, %v590_v11 }
 0x308   :  { %v705_v15 = vpack.c.bf16 %v702_v13, %v700_v12 }
 0x30a   :  { %1036 = vmatmul.msk.bf16.vlgmr.msrb.gmra.mxu0 %vm171_vm7, %v705_v15  ;;  %1041 = vmatmul.msk.bf16.vlgmr.msrb.gmra.mxu1 %vm171_vm7, %v705_v15 }
 0x387   :  { %v727_v25 = vpop.f32.mrf.mxu0  ;;  %v752_v43 = vpop.f32.mrf.mxu1 }
 0x388   :  { %v732_v30 = vadd.f32 %v727_v25, %v648_v27  ;;  %v757_v16 = vadd.f32 %v752_v43, %v673_v14 }
 0x38a   :  { %v763_v34 = vadd.f32 %v1134_v31, %v732_v30 }
 0x38c   :  { %1136 = vtanh.f32 %v763_v34 }
 0x38f   :  { %v729_v35 = vpop.f32.mrf.mxu0  ;;  %v754_v48 = vpop.f32.mrf.mxu1 }
 0x390   :  { %v733_v36 = vadd.f32 %v729_v35, %v649_v33  ;;  %v758_v6 = vadd.f32 %v754_v48, %v674_v4 }
 0x392   :  { %v764_v37 = vadd.f32 %v1134_v31, %v733_v36  ;;  %v1137_v38 = vpop.eup %1136 }
 0x394   :  { %1138 = vtanh.f32 %v764_v37 }
 0x39a   :  { %v1139_v39 = vpop.eup %1138 }
 0x39b   :  { %v767_v40 = vpack.c.bf16 %v1139_v39, %v1137_v38 }
 0x39d   :  { %840 = vmatmul.bf16.vlgmr.msrb.gmra.mxu2 %v767_v40 }
 0x420   :  { %v841_v45 = vpop.f32.mrf.mxu2 }
 0x421   :  { %v846_v46 = vadd.f32 %v841_v45, %v757_v16 }
 0x423   :  { %v852_v47 = vadd.f32 %v1135_v44, %v846_v46 }
 0x425   :  { %854 = vmax.xlane.f32.xlu0 %v852_v47 }
 0x428   :  { %v843_v49 = vpop.f32.mrf.mxu2 }
 0x429   :  { %v847_v50 = vadd.f32 %v843_v49, %v758_v6 }
 0x42b   :  { %v853_v7 = vadd.f32 %v1135_v44, %v847_v50 }
 0x42d   :  { %856 = vmax.xlane.f32.xlu1 %v853_v7 }
 0x498   :  { %v855_v51 = vpop.xlane.xlu0 %854 }
 0x499   :  { %v858_v8 = vsub.f32 %v852_v47, %v855_v51 }
 0x49b   :  { %v860_v52 = vmul.f32 1.442695, %v858_v8 }
 0x49d   :  { %1140 = vpow2.f32 %v860_v52 }
 0x4a0   :  { %v857_v53 = vpop.xlane.xlu1 %856 }
 0x4a1   :  { %v859_v54 = vsub.f32 %v853_v7, %v857_v53 }
 0x4a3   :  { %v1141_v55 = vpop.eup %1140  ;;  %v862_v56 = vmul.f32 1.442695, %v859_v54 }
 0x4a4   :  { %864 = vadd.xlane.f32.xlu2 %v1141_v55 }
 0x4a5   :  { %1142 = vpow2.f32 %v862_v56 }
 0x4ab   :  { %v1143_v57 = vpop.eup %1142 }
 0x4ac   :  { %866 = vadd.xlane.f32.xlu2 %v1143_v57 }
 0x517   :  { %v865_v58 = vpop.xlane.xlu2 %864 }
 0x518   :  { %1144 = vrcp.f32 %v865_v58  ;;  %v879_v3 = vand.u32 2147483648, %v865_v58  ;;  %vm873_vm3 = vweird.f32 %v865_v58  ;;  %v877_v5 = vand.u32 2147483647, %v865_v58 }
 0x51a   :  { %v880_v15 = vor.u32 1.1754944e-38, %v879_v3  ;;  %vm878_vm6 = vcmp.eq.f32.partialorder %v877_v5, 8.507059e+37 }
 0x51e   :  { %v1145_v59 = vpop.eup %1144 }
 0x51f   :  { %v869_v60 = vmul.f32 %v1145_v59, %v865_v58  ;;  %v867_v61 = vpop.xlane.xlu2 %866  ;;  %vm874_vm2 = vweird.f32 %v1145_v59 }
 0x520   :  { %1146 = vrcp.f32 %v867_v61  ;;  %vm875_vm4 = vmor %vm873_vm3, %vm874_vm2  ;;  %v894_v10 = vand.u32 2147483648, %v867_v61  ;;  %v892_v13 = vand.u32 2147483647, %v867_v61  ;;  %vm888_vm7 = vweird.f32 %v867_v61 }
 0x521   :  { %v870_v62 = vsub.f32 1.0, %v869_v60 }
 0x522   :  { %v895_v19 = vor.u32 1.1754944e-38, %v894_v10  ;;  %vm893_vm9 = vcmp.eq.f32.partialorder %v892_v13, 8.507059e+37 }
 0x523   :  { %v871_v63 = vmul.f32 %v1145_v59, %v870_v62 }
 0x525   :  { %v872_v1 = vadd.f32 %v1145_v59, %v871_v63 }
 0x526   :  { %v1147_v0 = vpop.eup %1146 }
 0x527   :  { %v884_v2 = vmul.f32 %v1147_v0, %v867_v61  ;;  %v876_v11 = vsel %vm875_vm4, %v1145_v59, %v872_v1  ;;  %vm889_vm5 = vweird.f32 %v1147_v0 }
 0x528   :  { %v881_v18 = vsel %vm878_vm6, %v880_v15, %v876_v11  ;;  %vm890_vm8 = vmor %vm888_vm7, %vm889_vm5 }
 0x529   :  { %v885_v9 = vsub.f32 1.0, %v884_v2  ;;  %v882_v22 = vmul.f32 %v1141_v55, %v881_v18 }
 0x52b   :  { %v886_v12 = vmul.f32 %v1147_v0, %v885_v9 }
 0x52d   :  { %v887_v17 = vadd.f32 %v1147_v0, %v886_v12 }
 0x52f   :  { %v891_v20 = vsel %vm890_vm8, %v1147_v0, %v887_v17 }
 0x530   :  { %v896_v21 = vsel %vm893_vm9, %v895_v19, %v891_v20 }
 0x531   :  { %v897_v23 = vmul.f32 %v1143_v57, %v896_v21 }
 0x533   :  { %v1105_v24 = vpack.c.bf16 %v897_v23, %v882_v22 }
 0x535   :  { %1106 = vst [vmem:[%s1450_s7] sm:$0xff] %v1105_v24  }
 0x536   :  { %906 = vsyncpa [#allocation3], 1 }
 0x537   :  { %907 = vsyncpa [#allocation5], 1 }

</bundles_post_ra>
